<compile_context>
chip_gen: v5e
topology: v5e:2x2
jax: 0.10.0
libtpu: 0.0.40
codegen_flags: <defaults>
</compile_context>

<pallas_src>
import jax
import jax.numpy as jnp
from jax.experimental import pallas as pl
from jax.experimental.pallas import tpu as pltpu


def _frozen_bn_kernel(scale_ref, shift_ref, x_ref, o_ref):
    # scale_ref, shift_ref: (ROW_TILE, 1) float32 in VMEM -> broadcast over lanes.
    # x_ref, o_ref:         (ROW_TILE, H*W) tiles (lane-dense last dim).
    x = x_ref[...].astype(jnp.float32)
    y = x * scale_ref[...] + shift_ref[...]
    o_ref[...] = y.astype(o_ref.dtype)


def _row_pack(dtype) -> int:
    # Sublane packing granularity for the second-to-last block dim.
    itemsize = jnp.dtype(dtype).itemsize
    if itemsize >= 4:
        return 8
    if itemsize == 2:
        return 16
    return 32


def frozen_batch_norm_2d(x, weight, bias, running_mean, running_var,
                         eps=1e-5, max_block_bytes=2 << 20):
    """x: (N, C, H, W). weight/bias/running_mean/running_var: (C,)."""
    N, C, H, W = x.shape
    NC, HW = N * C, H * W
    itemsize = jnp.dtype(x.dtype).itemsize

    # Per-channel affine folding in float32 (plain JAX glue, 4 scalars/channel).
    scale = (weight.astype(jnp.float32)
             * jax.lax.rsqrt(running_var.astype(jnp.float32) + eps))
    shift = bias.astype(jnp.float32) - running_mean.astype(jnp.float32) * scale

    # Per-row (n, c) parameter vectors: row r of the flattened tensor is
    # channel r % C, so broadcast over the batch dimension.
    scale_rows = jnp.broadcast_to(scale[None, :], (N, C)).reshape(NC, 1)
    shift_rows = jnp.broadcast_to(shift[None, :], (N, C)).reshape(NC, 1)

    # Flatten: rows = (n, c) pairs, columns = the full spatial plane.
    x_flat = x.reshape(NC, HW)

    # Row tile: as many pack-aligned rows as fit under max_block_bytes; if the
    # whole problem is smaller than that, one block covering all rows (a block
    # dim equal to the full array extent is always legal).
    pack = _row_pack(x.dtype)
    rows = (max_block_bytes // max(1, HW * itemsize)) // pack * pack
    rows = max(pack, rows)
    row_tile = NC if NC <= rows else rows
    grid = (pl.cdiv(NC, row_tile),)

    # VMEM budget: input + output, double-buffered, plus tiny param vectors.
    # Clamp for v7x's 64 MiB physical VMEM (fine on v5e/v6e too).
    tile_bytes = row_tile * HW * itemsize
    vmem_limit = int(min(max(4 * tile_bytes + (2 << 20), 16 << 20), 48 << 20))

    cost = pl.CostEstimate(
        flops=2 * NC * HW,
        transcendentals=0,
        bytes_accessed=2 * NC * HW * itemsize + 2 * NC * 4,
    )

    out_flat = pl.pallas_call(
        _frozen_bn_kernel,
        out_shape=jax.ShapeDtypeStruct((NC, HW), x.dtype),
        grid=grid,
        in_specs=[
            pl.BlockSpec((row_tile, 1), lambda i: (i, 0)),    # scale rows (f32)
            pl.BlockSpec((row_tile, 1), lambda i: (i, 0)),    # shift rows (f32)
            pl.BlockSpec((row_tile, HW), lambda i: (i, 0)),   # x
        ],
        out_specs=pl.BlockSpec((row_tile, HW), lambda i: (i, 0)),
        compiler_params=pltpu.CompilerParams(
            dimension_semantics=("parallel",),
            vmem_limit_bytes=vmem_limit,
        ),
        cost_estimate=cost,
    )(scale_rows, shift_rows, x_flat)

    return out_flat.reshape(N, C, H, W)


def _reference(x, weight, bias, running_mean, running_var, eps=1e-5):
    # Pure-JAX mirror of the PyTorch forward.
    w = weight.reshape(1, -1, 1, 1)
    b = bias.reshape(1, -1, 1, 1)
    rv = running_var.reshape(1, -1, 1, 1)
    rm = running_mean.reshape(1, -1, 1, 1)
    scale = w * jax.lax.rsqrt(rv + eps)
    shift = b - rm * scale
    return x * scale + shift


def _make_inputs(key, N, C, H, W):
    kx, kw, kb, km, kv = jax.random.split(key, 5)
    x = jax.random.normal(kx, (N, C, H, W), dtype=jnp.float32)
    weight = jnp.ones((C,), jnp.float32) + 0.1 * jax.random.normal(kw, (C,), jnp.float32)
    bias = 0.1 * jax.random.normal(kb, (C,), jnp.float32)
    running_mean = 0.1 * jax.random.normal(km, (C,), jnp.float32)
    running_var = jnp.ones((C,), jnp.float32) + 0.1 * jnp.abs(
        jax.random.normal(kv, (C,), jnp.float32))
    return x, weight, bias, running_mean, running_var


if __name__ == "__main__":
    key = jax.random.PRNGKey(0)
    k1, k2 = jax.random.split(key)

    # Test 1: small canonical shape; single lane-dense block (H*W = 256).
    x, w, b, rm, rv = _make_inputs(k1, 2, 4, 16, 16)
    y = jax.block_until_ready(frozen_batch_norm_2d(x, w, b, rm, rv))
    y_ref = _reference(x, w, b, rm, rv)
    assert y.shape == x.shape and y.dtype == x.dtype
    assert jnp.allclose(y, y_ref, atol=1e-6, rtol=1e-6), float(jnp.max(jnp.abs(y - y_ref)))

    # Test 2: odd sizes + tiny block budget to exercise a multi-step grid with a
    # partial last row block and a non-multiple-of-128 lane extent.
    x2, w2, b2, rm2, rv2 = _make_inputs(k2, 3, 7, 9, 10)
    y2 = jax.block_until_ready(
        frozen_batch_norm_2d(x2, w2, b2, rm2, rv2, max_block_bytes=4096))
    y2_ref = _reference(x2, w2, b2, rm2, rv2)
    assert y2.shape == x2.shape and y2.dtype == x2.dtype
    assert jnp.allclose(y2, y2_ref, atol=1e-6, rtol=1e-6), float(jnp.max(jnp.abs(y2 - y2_ref)))

    print("KERNEL_OK")
</pallas_src>

<mosaic_0001>
module attributes {stable_mosaic.version = 11 : i64} {
  func.func @_frozen_bn_kernel(%arg0: i32, %arg1: memref<8x1xf32, #tpu.memory_space<vmem>>, %arg2: memref<8x1xf32, #tpu.memory_space<vmem>>, %arg3: memref<8x256xf32, #tpu.memory_space<vmem>>, %arg4: memref<8x256xf32, #tpu.memory_space<vmem>>) attributes {dimension_semantics = [#tpu.dimension_semantics<parallel>], iteration_bounds = array<i64: 1>, scalar_prefetch = 0 : i64, scratch_operands = 0 : i64, tpu.core_type = #tpu.core_type<tc>, window_params = [{transform_indices = @transform_0, window_bounds = array<i64: 8, 1>}, {transform_indices = @transform_1, window_bounds = array<i64: 8, 1>}, {transform_indices = @transform_2, window_bounds = array<i64: 8, 256>}, {transform_indices = @transform_3, window_bounds = array<i64: 8, 256>}]} {
    %c0 = arith.constant 0 : index
    %c0_0 = arith.constant 0 : index
    %0 = vector.load %arg3[%c0, %c0_0] : memref<8x256xf32, #tpu.memory_space<vmem>>, vector<8x256xf32>
    %c0_1 = arith.constant 0 : index
    %c0_2 = arith.constant 0 : index
    %1 = vector.load %arg1[%c0_1, %c0_2] : memref<8x1xf32, #tpu.memory_space<vmem>>, vector<8x1xf32>
    %2 = vector.broadcast %1 : vector<8x1xf32> to vector<8x256xf32>
    %3 = arith.mulf %0, %2 : vector<8x256xf32>
    %c0_3 = arith.constant 0 : index
    %c0_4 = arith.constant 0 : index
    %4 = vector.load %arg2[%c0_3, %c0_4] : memref<8x1xf32, #tpu.memory_space<vmem>>, vector<8x1xf32>
    %5 = vector.broadcast %4 : vector<8x1xf32> to vector<8x256xf32>
    %6 = arith.addf %3, %5 : vector<8x256xf32>
    %c0_5 = arith.constant 0 : index
    %c0_6 = arith.constant 0 : index
    %7 = vector.load %arg4[%c0_5, %c0_6] : memref<8x256xf32, #tpu.memory_space<vmem>>, vector<8x256xf32>
    tpu.vector_store %arg4[%c0_5, %c0_6], %6 {strides = array<i32>} : memref<8x256xf32, #tpu.memory_space<vmem>>, vector<8x256xf32>,
    return
  }
  func.func @transform_0(%arg0: i32) -> (i32, i32) {
    %c0_i32 = arith.constant 0 : i32
    %c0_i32_0 = arith.constant 0 : i32
    return %arg0, %c0_i32 : i32, i32
  }
  func.func @transform_1(%arg0: i32) -> (i32, i32) {
    %c0_i32 = arith.constant 0 : i32
    %c0_i32_0 = arith.constant 0 : i32
    return %arg0, %c0_i32 : i32, i32
  }
  func.func @transform_2(%arg0: i32) -> (i32, i32) {
    %c0_i32 = arith.constant 0 : i32
    %c0_i32_0 = arith.constant 0 : i32
    return %arg0, %c0_i32 : i32, i32
  }
  func.func @transform_3(%arg0: i32) -> (i32, i32) {
    %c0_i32 = arith.constant 0 : i32
    %c0_i32_0 = arith.constant 0 : i32
    return %arg0, %c0_i32 : i32, i32
  }
}

</mosaic_0001>

<bundles_post_ra>
// kernel: tpu_custom_call.1
= control target key start
LH: loop header
LB: loop body
LE: loop exit
PB: predicated region body
PF: predicated region fallthrough
CT: control target
= control target key end

     0   :  { %s117_s0 = inlined_call_operand.vmem [shape: f32[8,1], index: 0, kind: input, shape index: {}]   ;;  %s118_s1 = inlined_call_operand.vmem [shape: f32[8,1], index: 1, kind: input, shape index: {}]   ;;  %s119_s2 = inlined_call_operand.vmem [shape: f32[8,256], index: 2, kind: input, shape index: {}]   ;;  %s120_s3 = inlined_call_operand.hbm [shape: f32[8,256], index: 3, kind: output, shape index: {}]  }
   0x1   :  { %v17_v0 = vld [vmem:[%s117_s0] sm:$0xff] }
   0x2   :  { %8 = vsyncpa [#allocation3], 0  ;;  %v80_v1 = vmov 0   ;;  %v25_v2 = vld [vmem:[%s118_s1] sm:$0xff]  ;;  %v16_v5 = vld [vmem:[%s119_s2 + $0x8] sm:$0xff]  ;;  %s81_s0 = smov [#allocation2]  }
   0x3   :  { %53 = vset.pattern.permute.xlu0 %v80_v1  ;;  %v15_v4 = vld [vmem:[%s119_s2] sm:$0xff]  ;;  %s40_s20 = sshll.u32 %s81_s0, 4  ;;  %s42_s23 = sshll.u32 %s120_s3, 4  ;;  %s41_s20 = int_to_ptr.vmem [resolvable:$true] %s40_s20  ;;  %s43_s23 = int_to_ptr.hbm [resolvable:$true] %s42_s23 }
   0x4   :  { %20 = vperm.xlu0 %53, %v17_v0  }
   0xc   :  { %28 = vperm.xlu0 %53, %v25_v2  }
  0x76   :  { %v21_v3 = vpop.permute.xlu0 %20 }
  0x77   :  { %v23_v6 = vmul.f32 %v21_v3, %v15_v4  ;;  %v24_v7 = vmul.f32 %v21_v3, %v16_v5 }
  0x7e   :  { %v29_v8 = vpop.permute.xlu0 %28 }
  0x7f   :  { %v31_v9 = vadd.f32 %v29_v8, %v23_v6  ;;  %v32_v10 = vadd.f32 %v29_v8, %v24_v7 }
  0x81   :  { %33 = vst [vmem:[#allocation2] sm:$0xff] %v31_v9 }
  0x82   :  { %34 = vst [vmem:[#allocation2 + $0x8] sm:$0xff] %v32_v10 }
  0x83   :  { %45 = dma.vmem_to_hbm [thread:$0]  %s41_s20, 256, %s43_s23, [#allocation3]  }
  0x84   :  { %78 = dma.done.wait [#allocation3], 256  }
  0x85   :  { %79 = vsyncadd [#allocation3], 4294967040 }
  0x86   :  { %50 = vsyncpa [#allocation3], 1 }

</bundles_post_ra>
